<compile_context>
chip_gen: v7x
topology: tpu7x:2x2x1
jax: 0.10.0
libtpu: 0.0.40
codegen_flags: <defaults>
</compile_context>

<pallas_src>
import functools

import jax
import jax.numpy as jnp
from jax.experimental import pallas as pl
from jax.experimental.pallas import tpu as pltpu


def _round_up(a, b):
    return (a + b - 1) // b * b


def _senet_kernel(x_ref, w1t_ref, b1_ref, w2t_ref, b2_ref, o_ref, acc_ref, *,
                  inv_hw, hw_rem, hw_tile):
    hw_step = pl.program_id(1)
    num_hw = pl.num_programs(1)

    @pl.when(hw_step == 0)
    def _():
        acc_ref[...] = jnp.zeros_like(acc_ref)

    x = x_ref[...]                                                    # (TB, C, HW_TILE)
    if hw_rem != 0:
        # HW tail: zero out the out-of-bounds lanes on the last hw step so garbage
        # does not contaminate the pooled sums. (Static no-op when HW % HW_TILE == 0.)
        limit = jnp.where(hw_step == num_hw - 1, hw_rem, hw_tile)
        lane = jax.lax.broadcasted_iota(jnp.int32, x.shape, x.ndim - 1)
        x = jnp.where(lane < limit, x, jnp.zeros_like(x))

    # Squeeze: accumulate partial spatial sums in f32 (no full-tile f32 copy).
    acc_ref[...] += jnp.sum(x, axis=-1, dtype=jnp.float32)            # (TB, C)

    @pl.when(hw_step == num_hw - 1)
    def _():
        pooled = acc_ref[...] * inv_hw                                 # (TB, C)
        # Compress (1x1 conv == matmul) + bias + ReLU.
        h = jnp.dot(pooled, w1t_ref[...],
                    preferred_element_type=jnp.float32) + b1_ref[...]  # (TB, Cr)
        h = jnp.maximum(h, 0.0)
        # Excitation (1x1 conv == matmul) + bias + sigmoid.
        g = jnp.dot(h, w2t_ref[...],
                    preferred_element_type=jnp.float32) + b2_ref[...]  # (TB, C)
        o_ref[...] = jax.nn.sigmoid(g).astype(o_ref.dtype)


def _vmem_capacity_bytes():
    try:
        return int(pltpu.get_tpu_info().vmem_capacity_bytes)
    except Exception:
        return 64 << 20   # conservative: v7x per-TensorCore VMEM


def _choose_tiles(N, C, HW, itemsize, budget):
    """Pick (TB, HW_TILE) so the double-buffered x tile fits `budget` bytes."""
    # Preferred batch tile: multiple of 8; >= 2 batch programs when N >= 16 so the
    # 'parallel' batch axis can shard across both v7x TensorCores; cap at 64.
    if N >= 16:
        tb = min(64, _round_up(_round_up(N, 8) // 2, 8))
    else:
        tb = _round_up(N, 8)
    tb = max(8, min(tb, 64))

    def fits(tb_, hwt_):
        return 2 * tb_ * C * hwt_ * itemsize <= budget

    def best_hwt(tb_):
        # Largest multiple of 128 that keeps the double-buffered tile in budget.
        cap = budget // (2 * tb_ * C * itemsize)
        hwt_ = (cap // 128) * 128
        return int(min(hwt_, _round_up(HW, 128)))

    # Prefer full-extent spatial tile: single hw step, no masking, exempt from (8,128).
    if fits(tb, HW):
        return tb, HW
    # Shrink HW_TILE first, but keep >= 512 lanes per step (DMA sweet spot).
    hwt = best_hwt(tb)
    if hwt >= 512:
        return tb, hwt
    # Then shrink the batch tile (keep >= 8 for sublane packing).
    while tb > 8:
        tb = max(8, _round_up(tb // 2, 8))
        if fits(tb, HW):
            return tb, HW
        hwt = best_hwt(tb)
        if hwt >= 512:
            return tb, hwt
    return 8, max(128, best_hwt(8))


@jax.jit
def senet_forward(x, w1, b1, w2, b2):
    """x: (N, C, H, W); w1: (Cr, C), b1: (Cr,), w2: (C, Cr), b2: (C,).
    Returns gate of shape (N, C, 1, 1), matching the PyTorch module."""
    N, C, H, W = x.shape
    Cr = w1.shape[0]
    HW = H * W
    itemsize = jnp.dtype(x.dtype).itemsize

    vmem_cap = _vmem_capacity_bytes()
    budget = int(0.75 * vmem_cap)                  # budget for the streamed x tile
    TB, HW_TILE = _choose_tiles(N, C, HW, itemsize, budget)

    x_flat = x.reshape(N, C, HW)                   # free reshape; no padding pass

    w1t = w1.T.astype(jnp.float32)                 # (C, Cr)
    w2t = w2.T.astype(jnp.float32)                 # (Cr, C)
    b1r = b1.reshape(1, Cr).astype(jnp.float32)    # (1, Cr)
    b2r = b2.reshape(1, C).astype(jnp.float32)     # (1, C)

    grid = (pl.cdiv(N, TB), pl.cdiv(HW, HW_TILE))
    hw_rem = HW % HW_TILE                          # 0 => no in-kernel masking needed

    # VMEM estimate: Pallas double-buffers the input/output tiles itself.
    x_tile_bytes = TB * C * HW_TILE * itemsize
    out_tile_bytes = TB * C * itemsize
    param_bytes = (2 * C * Cr + C + Cr) * 4
    vmem_bytes = (2 * x_tile_bytes + 2 * out_tile_bytes + 2 * param_bytes
                  + TB * C * 4 + (1 << 20))
    vmem_bytes = int(min(max(vmem_bytes, 4 << 20), int(0.9 * vmem_cap)))

    # This op is pure HBM bandwidth (~0.25 flop/byte): tell XLA's scheduler.
    cost = pl.CostEstimate(
        flops=int(N * C * HW + 4 * N * C * Cr),
        transcendentals=int(N * C),
        bytes_accessed=int(N * C * HW * itemsize + N * C * itemsize),
    )

    kernel = functools.partial(_senet_kernel, inv_hw=1.0 / HW,
                               hw_rem=hw_rem, hw_tile=HW_TILE)

    gate = pl.pallas_call(
        kernel,
        out_shape=jax.ShapeDtypeStruct((N, C), x.dtype),
        grid_spec=pltpu.PrefetchScalarGridSpec(
            num_scalar_prefetch=0,
            grid=grid,
            in_specs=[
                pl.BlockSpec((TB, C, HW_TILE), lambda b, h: (b, 0, h)),
                pl.BlockSpec((C, Cr), lambda b, h: (0, 0)),
                pl.BlockSpec((1, Cr), lambda b, h: (0, 0)),
                pl.BlockSpec((Cr, C), lambda b, h: (0, 0)),
                pl.BlockSpec((1, C), lambda b, h: (0, 0)),
            ],
            out_specs=pl.BlockSpec((TB, C), lambda b, h: (b, 0)),
            scratch_shapes=[pltpu.VMEM((TB, C), jnp.float32)],
        ),
        compiler_params=pltpu.CompilerParams(
            dimension_semantics=("parallel", "arbitrary"),
            vmem_limit_bytes=vmem_bytes,
        ),
        cost_estimate=cost,
    )(x_flat, w1t, b1r, w2t, b2r)

    return gate.reshape(N, C, 1, 1)


def senet_reference(x, w1, b1, w2, b2):
    pooled = jnp.mean(x.astype(jnp.float32), axis=(2, 3))        # (N, C)
    h = jnp.maximum(pooled @ w1.T + b1, 0.0)                      # (N, Cr)
    g = jax.nn.sigmoid(h @ w2.T + b2)                             # (N, C)
    return g.reshape(x.shape[0], x.shape[1], 1, 1).astype(x.dtype)


if __name__ == "__main__":
    # Small shapes consistent with the module: ratio=16 => C must be >= 16.
    N, C, H, W = 2, 32, 16, 16
    ratio = 16
    Cr = C // ratio

    key = jax.random.PRNGKey(0)
    kx, kw1, kb1, kw2, kb2 = jax.random.split(key, 5)

    x = jax.random.normal(kx, (N, C, H, W), dtype=jnp.float32)
    # Deterministic synthetic parameters (Conv2d 1x1 weights squeezed to 2D).
    w1 = jax.random.normal(kw1, (Cr, C), dtype=jnp.float32) * 0.1   # compress weight
    b1 = jax.random.normal(kb1, (Cr,), dtype=jnp.float32) * 0.1     # compress bias
    w2 = jax.random.normal(kw2, (C, Cr), dtype=jnp.float32) * 0.1   # excitation weight
    b2 = jax.random.normal(kb2, (C,), dtype=jnp.float32) * 0.1      # excitation bias

    out = senet_forward(x, w1, b1, w2, b2)
    jax.block_until_ready(out)

    ref = senet_reference(x, w1, b1, w2, b2)
    assert out.shape == (N, C, 1, 1)
    assert jnp.allclose(out, ref, atol=1e-5, rtol=1e-5)

    print("KERNEL_OK")
</pallas_src>

<mosaic_0001>
module attributes {stable_mosaic.version = 11 : i64} {
  func.func @_senet_kernel(%arg0: i32, %arg1: i32, %arg2: memref<8x32x256xf32, #tpu.memory_space<vmem>>, %arg3: memref<32x2xf32, #tpu.memory_space<vmem>>, %arg4: memref<1x2xf32, #tpu.memory_space<vmem>>, %arg5: memref<2x32xf32, #tpu.memory_space<vmem>>, %arg6: memref<1x32xf32, #tpu.memory_space<vmem>>, %arg7: memref<8x32xf32, #tpu.memory_space<vmem>>, %arg8: memref<8x32xf32, #tpu.memory_space<vmem>>) attributes {dimension_semantics = [#tpu.dimension_semantics<parallel>, #tpu.dimension_semantics<arbitrary>], iteration_bounds = array<i64: 1, 1>, scalar_prefetch = 0 : i64, scratch_operands = 1 : i64, tpu.core_type = #tpu.core_type<tc>, window_params = [{transform_indices = @transform_0, window_bounds = array<i64: 8, 32, 256>}, {pipeline_mode = #tpu.pipeline_mode<synchronous>, transform_indices = @transform_1, window_bounds = array<i64: 32, 2>}, {pipeline_mode = #tpu.pipeline_mode<synchronous>, transform_indices = @transform_2, window_bounds = array<i64: 1, 2>}, {pipeline_mode = #tpu.pipeline_mode<synchronous>, transform_indices = @transform_3, window_bounds = array<i64: 2, 32>}, {pipeline_mode = #tpu.pipeline_mode<synchronous>, transform_indices = @transform_4, window_bounds = array<i64: 1, 32>}, {transform_indices = @transform_5, window_bounds = array<i64: 8, 32>}]} {
    %c0_i32 = arith.constant 0 : i32
    %0 = arith.cmpi eq, %arg1, %c0_i32 : i32
    %1 = arith.extui %0 : i1 to i32
    %c0_i32_0 = arith.constant 0 : i32
    %2 = arith.cmpi ne, %1, %c0_i32_0 : i32
    scf.if %2 {
      %cst_9 = arith.constant 0.000000e+00 : f32
      %11 = vector.broadcast %cst_9 : f32 to vector<8x32xf32>
      %c0_10 = arith.constant 0 : index
      %c0_11 = arith.constant 0 : index
      %12 = vector.load %arg8[%c0_10, %c0_11] : memref<8x32xf32, #tpu.memory_space<vmem>>, vector<8x32xf32>
      tpu.vector_store %arg8[%c0_10, %c0_11], %11 {strides = array<i32>} : memref<8x32xf32, #tpu.memory_space<vmem>>, vector<8x32xf32>,
    } else {
    }
    %c0 = arith.constant 0 : index
    %c0_1 = arith.constant 0 : index
    %c0_2 = arith.constant 0 : index
    %3 = vector.load %arg2[%c0, %c0_1, %c0_2] : memref<8x32x256xf32, #tpu.memory_space<vmem>>, vector<8x32x256xf32>
    %c0_3 = arith.constant 0 : index
    %c0_4 = arith.constant 0 : index
    %4 = vector.load %arg8[%c0_3, %c0_4] : memref<8x32xf32, #tpu.memory_space<vmem>>, vector<8x32xf32>
    %cst = arith.constant dense<0.000000e+00> : vector<8x32xf32>
    %5 = vector.multi_reduction <add>, %3, %cst [2] : vector<8x32x256xf32> to vector<8x32xf32>
    %6 = arith.addf %4, %5 : vector<8x32xf32>
    %c0_5 = arith.constant 0 : index
    %c0_6 = arith.constant 0 : index
    %7 = vector.load %arg8[%c0_5, %c0_6] : memref<8x32xf32, #tpu.memory_space<vmem>>, vector<8x32xf32>
    tpu.vector_store %arg8[%c0_5, %c0_6], %6 {strides = array<i32>} : memref<8x32xf32, #tpu.memory_space<vmem>>, vector<8x32xf32>,
    %c0_i32_7 = arith.constant 0 : i32
    %8 = arith.cmpi eq, %arg1, %c0_i32_7 : i32
    %9 = arith.extui %8 : i1 to i32
    %c0_i32_8 = arith.constant 0 : i32
    %10 = arith.cmpi ne, %9, %c0_i32_8 : i32
    scf.if %10 {
      %c0_9 = arith.constant 0 : index
      %c0_10 = arith.constant 0 : index
      %11 = vector.load %arg8[%c0_9, %c0_10] : memref<8x32xf32, #tpu.memory_space<vmem>>, vector<8x32xf32>
      %cst_11 = arith.constant 3.906250e-03 : f32
      %12 = vector.broadcast %cst_11 : f32 to vector<8x32xf32>
      %13 = arith.mulf %11, %12 : vector<8x32xf32>
      %c0_12 = arith.constant 0 : index
      %c0_13 = arith.constant 0 : index
      %14 = vector.load %arg3[%c0_12, %c0_13] : memref<32x2xf32, #tpu.memory_space<vmem>>, vector<32x2xf32>
      %cst_14 = arith.constant dense<0.000000e+00> : vector<8x2xf32>
      %15 = tpu.matmul %13, %14, %cst_14 {dimension_numbers = #tpu.dot_dimension_numbers<[1], [0], [0], [1], [0, 0, 1, 1], [], []>} : vector<8x32xf32>, vector<32x2xf32>, vector<8x2xf32> -> vector<8x2xf32>
      %c0_15 = arith.constant 0 : index
      %c0_16 = arith.constant 0 : index
      %16 = vector.load %arg4[%c0_15, %c0_16] : memref<1x2xf32, #tpu.memory_space<vmem>>, vector<1x2xf32>
      %17 = vector.broadcast %16 : vector<1x2xf32> to vector<8x2xf32>
      %18 = arith.addf %15, %17 : vector<8x2xf32>
      %cst_17 = arith.constant 0.000000e+00 : f32
      %19 = vector.broadcast %cst_17 : f32 to vector<8x2xf32>
      %20 = arith.maximumf %18, %19 : vector<8x2xf32>
      %c0_18 = arith.constant 0 : index
      %c0_19 = arith.constant 0 : index
      %21 = vector.load %arg5[%c0_18, %c0_19] : memref<2x32xf32, #tpu.memory_space<vmem>>, vector<2x32xf32>
      %cst_20 = arith.constant dense<0.000000e+00> : vector<8x32xf32>
      %22 = tpu.matmul %20, %21, %cst_20 {dimension_numbers = #tpu.dot_dimension_numbers<[1], [0], [0], [1], [0, 0, 1, 1], [], []>} : vector<8x2xf32>, vector<2x32xf32>, vector<8x32xf32> -> vector<8x32xf32>
      %c0_21 = arith.constant 0 : index
      %c0_22 = arith.constant 0 : index
      %23 = vector.load %arg6[%c0_21, %c0_22] : memref<1x32xf32, #tpu.memory_space<vmem>>, vector<1x32xf32>
      %24 = vector.broadcast %23 : vector<1x32xf32> to vector<8x32xf32>
      %25 = arith.addf %22, %24 : vector<8x32xf32>
      %26 = arith.negf %25 : vector<8x32xf32>
      %27 = math.exp %26 : vector<8x32xf32>
      %cst_23 = arith.constant 1.000000e+00 : f32
      %28 = vector.broadcast %cst_23 : f32 to vector<8x32xf32>
      %29 = arith.addf %28, %27 : vector<8x32xf32>
      %30 = arith.divf %28, %29 : vector<8x32xf32>
      %c0_24 = arith.constant 0 : index
      %c0_25 = arith.constant 0 : index
      %31 = vector.load %arg7[%c0_24, %c0_25] : memref<8x32xf32, #tpu.memory_space<vmem>>, vector<8x32xf32>
      tpu.vector_store %arg7[%c0_24, %c0_25], %30 {strides = array<i32>} : memref<8x32xf32, #tpu.memory_space<vmem>>, vector<8x32xf32>,
    } else {
    }
    return
  }
  func.func @transform_0(%arg0: i32, %arg1: i32) -> (i32, i32, i32) {
    %c0_i32 = arith.constant 0 : i32
    %c0_i32_0 = arith.constant 0 : i32
    return %arg0, %c0_i32, %arg1 : i32, i32, i32
  }
  func.func @transform_1(%arg0: i32, %arg1: i32) -> (i32, i32) {
    %c0_i32 = arith.constant 0 : i32
    %c0_i32_0 = arith.constant 0 : i32
    %c0_i32_1 = arith.constant 0 : i32
    return %c0_i32, %c0_i32_0 : i32, i32
  }
  func.func @transform_2(%arg0: i32, %arg1: i32) -> (i32, i32) {
    %c0_i32 = arith.constant 0 : i32
    %c0_i32_0 = arith.constant 0 : i32
    %c0_i32_1 = arith.constant 0 : i32
    return %c0_i32, %c0_i32_0 : i32, i32
  }
  func.func @transform_3(%arg0: i32, %arg1: i32) -> (i32, i32) {
    %c0_i32 = arith.constant 0 : i32
    %c0_i32_0 = arith.constant 0 : i32
    %c0_i32_1 = arith.constant 0 : i32
    return %c0_i32, %c0_i32_0 : i32, i32
  }
  func.func @transform_4(%arg0: i32, %arg1: i32) -> (i32, i32) {
    %c0_i32 = arith.constant 0 : i32
    %c0_i32_0 = arith.constant 0 : i32
    %c0_i32_1 = arith.constant 0 : i32
    return %c0_i32, %c0_i32_0 : i32, i32
  }
  func.func @transform_5(%arg0: i32, %arg1: i32) -> (i32, i32) {
    %c0_i32 = arith.constant 0 : i32
    %c0_i32_0 = arith.constant 0 : i32
    return %arg0, %c0_i32 : i32, i32
  }
}

</mosaic_0001>

<bundles_post_ra>
// kernel: senet_forward.1
= control target key start
LH: loop header
LB: loop body
LE: loop exit
PB: predicated region body
PF: predicated region fallthrough
CT: control target
= control target key end

     0   :  { %s1032_s0 = inlined_call_operand.vmem [shape: f32[2,32,256], index: 0, kind: input, shape index: {}]   ;;  %s1033_s1 = inlined_call_operand.vmem [shape: f32[32,2], index: 1, kind: input, shape index: {}]   ;;  %s1034_s2 = inlined_call_operand.vmem [shape: f32[1,2], index: 2, kind: input, shape index: {}]   ;;  %s1035_s3 = inlined_call_operand.vmem [shape: f32[2,32], index: 3, kind: input, shape index: {}]   ;;  %s1036_s4 = inlined_call_operand.vmem [shape: f32[1,32], index: 4, kind: input, shape index: {}]   ;;  %s1037_s5 = inlined_call_operand.hbm [shape: f32[2,32], index: 5, kind: output, shape index: {}]  }
   0x1   :  { %v35_v0 = vld [vmem:[%s1032_s0 + $0x40] sm:$0xff]  ;;  %v36_v1 = vld [vmem:[%s1032_s0 + $0x48] sm:$0xff]  ;;  %v37_v5 = vld [vmem:[%s1032_s0 + $0x50] sm:$0xff] }
   0x2   :  { %v27_v2 = vld [vmem:[%s1032_s0] sm:$0xff]  ;;  %v104_v3 = vadd.f32 %v36_v1, %v35_v0  ;;  %v28_v4 = vld [vmem:[%s1032_s0 + $0x8] sm:$0xff]  ;;  %v38_v6 = vld [vmem:[%s1032_s0 + $0x58] sm:$0xff] }
   0x3   :  { %v92_v7 = vadd.f32 %v28_v4, %v27_v2  ;;  %v29_v8 = vld [vmem:[%s1032_s0 + $0x10] sm:$0xff]  ;;  %v30_v9 = vld [vmem:[%s1032_s0 + $0x18] sm:$0xff]  ;;  %v107_v10 = vadd.f32 %v38_v6, %v37_v5  ;;  %v39_v12 = vld [vmem:[%s1032_s0 + $0x60] sm:$0xff] }
   0x4   :  { %105 = vadd.xlane.f32.xlu1 %v104_v3  ;;  %v95_v11 = vadd.f32 %v30_v9, %v29_v8  ;;  %v40_v13 = vld [vmem:[%s1032_s0 + $0x68] sm:$0xff]  ;;  %v31_v14 = vld [vmem:[%s1032_s0 + $0x20] sm:$0xff]  ;;  %v45_v18 = vld [vmem:[%s1032_s0 + $0x90] sm:$0xff] }
   0x5   :  { %93 = vadd.xlane.f32.xlu0 %v92_v7  ;;  %v32_v15 = vld [vmem:[%s1032_s0 + $0x28] sm:$0xff]  ;;  %v110_v16 = vadd.f32 %v40_v13, %v39_v12  ;;  %v46_v19 = vld [vmem:[%s1032_s0 + $0x98] sm:$0xff]  ;;  %v43_v20 = vld [vmem:[%s1032_s0 + $0x80] sm:$0xff] }
   0x6   :  { %v98_v17 = vadd.f32 %v32_v15, %v31_v14  ;;  %v44_v21 = vld [vmem:[%s1032_s0 + $0x88] sm:$0xff]  ;;  %v119_v22 = vadd.f32 %v46_v19, %v45_v18  ;;  %v41_v24 = vld [vmem:[%s1032_s0 + $0x70] sm:$0xff]  ;;  %v42_v25 = vld [vmem:[%s1032_s0 + $0x78] sm:$0xff] }
   0x7   :  { %v116_v23 = vadd.f32 %v44_v21, %v43_v20  ;;  %v33_v26 = vld [vmem:[%s1032_s0 + $0x30] sm:$0xff]  ;;  %v34_v27 = vld [vmem:[%s1032_s0 + $0x38] sm:$0xff]  ;;  %v113_v28 = vadd.f32 %v42_v25, %v41_v24  ;;  %v51_v30 = vld [vmem:[%s1032_s0 + $0xc0] sm:$0xff] }
   0x8   :  { %108 = vadd.xlane.f32.xlu1 %v107_v10  ;;  %v101_v29 = vadd.f32 %v34_v27, %v33_v26  ;;  %v52_v31 = vld [vmem:[%s1032_s0 + $0xc8] sm:$0xff]  ;;  %v47_v32 = vld [vmem:[%s1032_s0 + $0xa0] sm:$0xff]  ;;  %v49_v36 = vld [vmem:[%s1032_s0 + $0xb0] sm:$0xff] }
   0x9   :  { %96 = vadd.xlane.f32.xlu0 %v95_v11  ;;  %v48_v33 = vld [vmem:[%s1032_s0 + $0xa8] sm:$0xff]  ;;  %v128_v34 = vadd.f32 %v52_v31, %v51_v30  ;;  %v50_v37 = vld [vmem:[%s1032_s0 + $0xb8] sm:$0xff]  ;;  %v53_v38 = vld [vmem:[%s1032_s0 + $0xd0] sm:$0xff] }
   0xa   :  { %v122_v35 = vadd.f32 %v48_v33, %v47_v32  ;;  %v54_v39 = vld [vmem:[%s1032_s0 + $0xd8] sm:$0xff] }
   0xc   :  { %111 = vadd.xlane.f32.xlu1 %v110_v16 }
   0xd   :  { %99 = vadd.xlane.f32.xlu0 %v98_v17 }
  0x10   :  { %120 = vadd.xlane.f32.xlu1 %v119_v22 }
  0x11   :  { %117 = vadd.xlane.f32.xlu0 %v116_v23 }
  0x14   :  { %114 = vadd.xlane.f32.xlu1 %v113_v28 }
  0x15   :  { %102 = vadd.xlane.f32.xlu0 %v101_v29 }
  0x16   :  { %10 = vsyncpa [#allocation4], 0  ;;  %v125_v40 = vadd.f32 %v50_v37, %v49_v36  ;;  %v131_v41 = vadd.f32 %v54_v39, %v53_v38  ;;  %v59_v42 = vld [vmem:[%s1032_s0 + $0x100] sm:$0xff]  ;;  %v60_v43 = vld [vmem:[%s1032_s0 + $0x108] sm:$0xff]  ;;  %vm25_vm0 = vcmask 261120   ;;  %v666_v32 = vmov 0.0  }
  0x17   :  { %v55_v44 = vld [vmem:[%s1032_s0 + $0xe0] sm:$0xff]  ;;  %v56_v45 = vld [vmem:[%s1032_s0 + $0xe8] sm:$0xff]  ;;  %v140_v46 = vadd.f32 %v60_v43, %v59_v42  ;;  %v57_v48 = vld [vmem:[%s1032_s0 + $0xf0] sm:$0xff]  ;;  %26 = vst.msk [vmem:[#allocation2] sm:$0xff] %vm25_vm0, %v666_v32  ;;  %621 = vmatprep.subr.mxu1 %v666_v32  ;;  %v667_v36 = vmov 0.0|0.0   ;;  %vm668_vm1 = vmmov 0  }
  0x18   :  { %129 = vadd.xlane.f32.xlu1 %v128_v34  ;;  %v134_v47 = vadd.f32 %v56_v45, %v55_v44  ;;  %v58_v49 = vld [vmem:[%s1032_s0 + $0xf8] sm:$0xff]  ;;  %v61_v50 = vld [vmem:[%s1032_s0 + $0x110] sm:$0xff]  ;;  %v67_v54 = vld [vmem:[%s1032_s0 + $0x140] sm:$0xff]  ;;  %626 = vmatprep.subr.bf16.mxu0 %v667_v36  ;;  %vm231_vm2 = vcmask 130112   ;;  %vm238_vm3 = vcmask 195712   ;;  %vm245_vm4 = vcmask 261312  }
  0x19   :  { %123 = vadd.xlane.f32.xlu0 %v122_v35  ;;  %v62_v51 = vld [vmem:[%s1032_s0 + $0x118] sm:$0xff]  ;;  %v137_v52 = vadd.f32 %v58_v49, %v57_v48  ;;  %v68_v55 = vld [vmem:[%s1032_s0 + $0x148] sm:$0xff]  ;;  %v63_v56 = vld [vmem:[%s1032_s0 + $0x120] sm:$0xff]  ;;  %618 = vmatprep.mubr.msk.f32.mxu0 %vm668_vm1, %v666_v32  ;;  %vm380_vm5 = vcmask 1041409   ;;  %vm382_vm6 = vcmask 1042434   ;;  %vm384_vm7 = vcmask 1043459  }
  0x1a   :  { %v143_v53 = vadd.f32 %v62_v51, %v61_v50  ;;  %v64_v57 = vld [vmem:[%s1032_s0 + $0x128] sm:$0xff]  ;;  %v152_v58 = vadd.f32 %v68_v55, %v67_v54  ;;  %v65_v60 = vld [vmem:[%s1032_s0 + $0x130] sm:$0xff]  ;;  %v66_v61 = vld [vmem:[%s1032_s0 + $0x138] sm:$0xff]  ;;  %623 = vmatprep.mubr.msk.f32.mxu1 %vm668_vm1, %v666_v32  ;;  %vm386_vm8 = vcmask 1044484   ;;  %vm388_vm9 = vcmask 1045509  }
  0x1b   :  { %v146_v59 = vadd.f32 %v64_v57, %v63_v56  ;;  %v69_v62 = vld [vmem:[%s1032_s0 + $0x150] sm:$0xff]  ;;  %v70_v63 = vld [vmem:[%s1032_s0 + $0x158] sm:$0xff]  ;;  %v149_v0 = vadd.f32 %v66_v61, %v65_v60  ;;  %v75_v2 = vld [vmem:[%s1032_s0 + $0x180] sm:$0xff]  ;;  %v220_v56 = vlaneseq  ;;  %vm390_vm10 = vcmask 1046534  }
  0x1c   :  { %126 = vadd.xlane.f32.xlu1 %v125_v40  ;;  %v155_v1 = vadd.f32 %v70_v63, %v69_v62  ;;  %v76_v3 = vld [vmem:[%s1032_s0 + $0x188] sm:$0xff]  ;;  %v71_v4 = vld [vmem:[%s1032_s0 + $0x160] sm:$0xff]  ;;  %v73_v8 = vld [vmem:[%s1032_s0 + $0x170] sm:$0xff]  ;;  %vm392_vm11 = vcmask 1047559   ;;  %vm500_vm12 = vcmask 1041408   ;;  %vm496_vm13 = vcmask 15360  }
  0x1d   :  { %132 = vadd.xlane.f32.xlu0 %v131_v41  ;;  %v72_v5 = vld [vmem:[%s1032_s0 + $0x168] sm:$0xff]  ;;  %v164_v6 = vadd.f32 %v76_v3, %v75_v2  ;;  %v74_v9 = vld [vmem:[%s1032_s0 + $0x178] sm:$0xff]  ;;  %v77_v10 = vld [vmem:[%s1032_s0 + $0x190] sm:$0xff] }
  0x1e   :  { %v158_v7 = vadd.f32 %v72_v5, %v71_v4  ;;  %v78_v11 = vld [vmem:[%s1032_s0 + $0x198] sm:$0xff]  ;;  %v161_v12 = vadd.f32 %v74_v9, %v73_v8  ;;  %v83_v14 = vld [vmem:[%s1032_s0 + $0x1c0] sm:$0xff]  ;;  %v84_v15 = vld [vmem:[%s1032_s0 + $0x1c8] sm:$0xff] }
  0x1f   :  { %v167_v13 = vadd.f32 %v78_v11, %v77_v10  ;;  %v79_v16 = vld [vmem:[%s1032_s0 + $0x1a0] sm:$0xff]  ;;  %v80_v17 = vld [vmem:[%s1032_s0 + $0x1a8] sm:$0xff]  ;;  %v176_v18 = vadd.f32 %v84_v15, %v83_v14  ;;  %v81_v20 = vld [vmem:[%s1032_s0 + $0x1b0] sm:$0xff] }
  0x20   :  { %141 = vadd.xlane.f32.xlu1 %v140_v46  ;;  %v170_v19 = vadd.f32 %v80_v17, %v79_v16  ;;  %v82_v21 = vld [vmem:[%s1032_s0 + $0x1b8] sm:$0xff]  ;;  %v85_v22 = vld [vmem:[%s1032_s0 + $0x1d0] sm:$0xff]  ;;  %v87_v28 = vld [vmem:[%s1032_s0 + $0x1e0] sm:$0xff] }
  0x21   :  { %135 = vadd.xlane.f32.xlu0 %v134_v47  ;;  %v86_v23 = vld [vmem:[%s1032_s0 + $0x1d8] sm:$0xff]  ;;  %v173_v24 = vadd.f32 %v82_v21, %v81_v20  ;;  %v89_v26 = vld [vmem:[%s1032_s0 + $0x1f0] sm:$0xff]  ;;  %v88_v29 = vld [vmem:[%s1032_s0 + $0x1e8] sm:$0xff] }
  0x22   :  { %v179_v25 = vadd.f32 %v86_v23, %v85_v22  ;;  %v90_v27 = vld [vmem:[%s1032_s0 + $0x1f8] sm:$0xff]  ;;  %v182_v31 = vadd.f32 %v88_v29, %v87_v28  ;;  %v403_v33 = vld [vmem:[%s1033_s1] sm:$0xff]  ;;  %v404_v34 = vld [vmem:[%s1033_s1 + $0x8] sm:$0xff] }
  0x23   :  { %v185_v30 = vadd.f32 %v90_v27, %v89_v26  ;;  %v405_v35 = vld [vmem:[%s1033_s1 + $0x10] sm:$0xff]  ;;  %v627_v37 = vpack.c.bf16 %v404_v34, %v403_v33  ;;  %v406_v38 = vld [vmem:[%s1033_s1 + $0x18] sm:$0xff] }
  0x24   :  { %138 = vadd.xlane.f32.xlu1 %v137_v52  ;;  %v630_v39 = vpack.c.bf16 %v406_v38, %v405_v35 }
  0x25   :  { %144 = vadd.xlane.f32.xlu0 %v143_v53  ;;  %628 = vmatpush3.bf16.msra.mxu0 %v627_v37 }
  0x26   :  { %629 = vmatprep.subr.bf16.mxu0 %v667_v36 }
  0x28   :  { %153 = vadd.xlane.f32.xlu1 %v152_v58 }
  0x29   :  { %147 = vadd.xlane.f32.xlu0 %v146_v59  ;;  %631 = vmatpush3.bf16.msra.mxu0 %v630_v39  ;;  %v221_v59 = vand.u32 127, %v220_v56 }
  0x2b   :  { %v226_v60 = vadd.s32 4294967288, %v221_v59  ;;  %v233_v62 = vadd.s32 4294967280, %v221_v59 }
  0x2c   :  { %150 = vadd.xlane.f32.xlu1 %v149_v0  ;;  %v223_v0 = vshrl.u32 %v220_v56, 7 }
  0x2d   :  { %156 = vadd.xlane.f32.xlu0 %v155_v1  ;;  %v240_v1 = vadd.s32 4294967272, %v221_v59 }
  0x2e   :  { %v923_v2 = vsub.s32 %v226_v60, %v223_v0  ;;  %v927_v4 = vsub.s32 %v233_v62, %v223_v0 }
  0x30   :  { %165 = vadd.xlane.f32.xlu1 %v164_v6  ;;  %v931_v6 = vsub.s32 %v221_v59, %v223_v0 }
  0x31   :  { %159 = vadd.xlane.f32.xlu0 %v158_v7  ;;  %v933_v7 = vsub.s32 %v240_v1, %v223_v0 }
  0x34   :  { %162 = vadd.xlane.f32.xlu1 %v161_v12 }
  0x35   :  { %168 = vadd.xlane.f32.xlu0 %v167_v13 }
  0x38   :  { %177 = vadd.xlane.f32.xlu1 %v176_v18 }
  0x39   :  { %171 = vadd.xlane.f32.xlu0 %v170_v19 }
  0x3c   :  { %174 = vadd.xlane.f32.xlu1 %v173_v24 }
  0x3d   :  { %180 = vadd.xlane.f32.xlu0 %v179_v25 }
  0x40   :  { %186 = vadd.xlane.f32.xlu1 %v185_v30 }
  0x41   :  { %183 = vadd.xlane.f32.xlu0 %v182_v31 }
  0x91   :  { %v106_v40 = vpop.xlane.xlu1 %105 }
  0x92   :  { %v94_v41 = vpop.xlane.xlu0 %93  ;;  %v250_v14 = vrot.slane %v106_v40, %v931_v6 }
  0x93   :  { %v225_v15 = vrot.slane %v94_v41, %v931_v6 }
  0x95   :  { %v109_v42 = vpop.xlane.xlu1 %108 }
  0x96   :  { %v97_v43 = vpop.xlane.xlu0 %96  ;;  %v254_v8 = vrot.slane %v109_v42, %v923_v2 }
  0x97   :  { %v230_v9 = vrot.slane %v97_v43, %v923_v2 }
  0x98   :  { %v255_v18 = vsel %vm231_vm2, %v254_v8, %v250_v14 }
  0x99   :  { %v112_v44 = vpop.xlane.xlu1 %111  ;;  %v232_v19 = vsel %vm231_vm2, %v230_v9, %v225_v15 }
  0x9a   :  { %v100_v45 = vpop.xlane.xlu0 %99  ;;  %v259_v11 = vrot.slane %v112_v44, %v927_v4 }
  0x9b   :  { %v237_v12 = vrot.slane %v100_v45, %v927_v4 }
  0x9c   :  { %v260_v21 = vsel %vm238_vm3, %v259_v11, %v255_v18 }
  0x9d   :  { %v121_v46 = vpop.xlane.xlu1 %120  ;;  %v239_v22 = vsel %vm238_vm3, %v237_v12, %v232_v19 }
  0x9e   :  { %v118_v47 = vpop.xlane.xlu0 %117  ;;  %v273_v23 = vrot.slane %v121_v46, %v923_v2 }
  0x9f   :  { %v269_v24 = vrot.slane %v118_v47, %v931_v6 }
  0xa1   :  { %v115_v48 = vpop.xlane.xlu1 %114  ;;  %v274_v31 = vsel %vm231_vm2, %v273_v23, %v269_v24 }
  0xa2   :  { %v103_v49 = vpop.xlane.xlu0 %102  ;;  %v264_v16 = vrot.slane %v115_v48, %v933_v7 }
  0xa3   :  { %v244_v17 = vrot.slane %v103_v49, %v933_v7 }
  0xa4   :  { %v265_v26 = vsel %vm245_vm4, %v264_v16, %v260_v21  ;;  %v91_v16 = vld [vmem:[#allocation2] sm:$0xff] }
  0xa5   :  { %v907_v50 = vpop.xlane.xlu1 %129  ;;  %v246_v27 = vsel %vm245_vm4, %v244_v17, %v239_v22  ;;  %v597_v22 = vld [vmem:[%s1034_s2] ss:$0 sm:$0xff] }
  0xa6   :  { %v124_v51 = vpop.xlane.xlu0 %123  ;;  %v381_v32 = vsel %vm380_vm5, %v265_v26, %v246_v27  ;;  %v288_v35 = vrot.slane %v907_v50, %v931_v6  ;;  %v599_v27 = vld [vmem:[%s1036_s4] ss:$0 sm:$0xff] }
  0xa7   :  { %v278_v28 = vrot.slane %v124_v51, %v927_v4 }
  0xa9   :  { %v127_v52 = vpop.xlane.xlu1 %126  ;;  %v279_v36 = vsel %vm238_vm3, %v278_v28, %v274_v31 }
  0xaa   :  { %v909_v53 = vpop.xlane.xlu0 %132  ;;  %v283_v29 = vrot.slane %v127_v52, %v933_v7 }
  0xab   :  { %v292_v33 = vrot.slane %v909_v53, %v923_v2 }
  0xac   :  { %v284_v39 = vsel %vm245_vm4, %v283_v29, %v279_v36 }
  0xad   :  { %v911_v54 = vpop.xlane.xlu1 %141  ;;  %v293_v48 = vsel %vm231_vm2, %v292_v33, %v288_v35 }
  0xae   :  { %v913_v55 = vpop.xlane.xlu0 %135  ;;  %v307_v43 = vrot.slane %v911_v54, %v931_v6 }
  0xaf   :  { %v297_v37 = vrot.slane %v913_v55, %v927_v4 }
  0xb1   :  { %v915_v57 = vpop.xlane.xlu1 %138  ;;  %v298_v53 = vsel %vm238_vm3, %v297_v37, %v293_v48 }
  0xb2   :  { %v917_v58 = vpop.xlane.xlu0 %144  ;;  %v302_v40 = vrot.slane %v915_v57, %v933_v7 }
  0xb3   :  { %v311_v38 = vrot.slane %v917_v58, %v923_v2 }
  0xb4   :  { %v303_v57 = vsel %vm245_vm4, %v302_v40, %v298_v53 }
  0xb5   :  { %v919_v61 = vpop.xlane.xlu1 %153  ;;  %v312_v54 = vsel %vm231_vm2, %v311_v38, %v307_v43 }
  0xb6   :  { %v921_v63 = vpop.xlane.xlu0 %147  ;;  %v326_v49 = vrot.slane %v919_v61, %v931_v6  ;;  %v383_v61 = vsel %vm382_vm6, %v284_v39, %v381_v32 }
  0xb7   :  { %v316_v41 = vrot.slane %v921_v63, %v927_v4 }
  0xb9   :  { %v925_v3 = vpop.xlane.xlu1 %150  ;;  %v317_v58 = vsel %vm238_vm3, %v316_v41, %v312_v54 }
  0xba   :  { %v929_v5 = vpop.xlane.xlu0 %156  ;;  %v321_v44 = vrot.slane %v925_v3, %v933_v7 }
  0xbb   :  { %v330_v42 = vrot.slane %v929_v5, %v923_v2 }
  0xbc   :  { %v322_v62 = vsel %vm245_vm4, %v321_v44, %v317_v58 }
  0xbd   :  { %v937_v10 = vpop.xlane.xlu1 %165  ;;  %v331_v59 = vsel %vm231_vm2, %v330_v42, %v326_v49 }
  0xbe   :  { %v160_v13 = vpop.xlane.xlu0 %159  ;;  %v345_v55 = vrot.slane %v937_v10, %v931_v6 }
  0xbf   :  { %v335_v45 = vrot.slane %v160_v13, %v927_v4 }
  0xc1   :  { %v163_v20 = vpop.xlane.xlu1 %162  ;;  %v336_v63 = vsel %vm238_vm3, %v335_v45, %v331_v59 }
  0xc2   :  { %v169_v25 = vpop.xlane.xlu0 %168  ;;  %v340_v50 = vrot.slane %v163_v20, %v933_v7 }
  0xc3   :  { %v349_v46 = vrot.slane %v169_v25, %v923_v2 }
  0xc4   :  { %v341_v3 = vsel %vm245_vm4, %v340_v50, %v336_v63 }
  0xc5   :  { %v178_v30 = vpop.xlane.xlu1 %177  ;;  %v350_v0 = vsel %vm231_vm2, %v349_v46, %v345_v55 }
  0xc6   :  { %v172_v34 = vpop.xlane.xlu0 %171  ;;  %v364_v5 = vrot.slane %v178_v30, %v931_v6 }
  0xc7   :  { %v354_v51 = vrot.slane %v172_v34, %v927_v4 }
  0xc9   :  { %v175_v47 = vpop.xlane.xlu1 %174  ;;  %v355_v8 = vsel %vm238_vm3, %v354_v51, %v350_v0 }
  0xca   :  { %v181_v52 = vpop.xlane.xlu0 %180  ;;  %v359_v56 = vrot.slane %v175_v47, %v933_v7 }
  0xcb   :  { %v368_v60 = vrot.slane %v181_v52, %v923_v2  ;;  %v385_v2 = vsel %vm384_vm7, %v303_v57, %v383_v61 }
  0xcc   :  { %v360_v11 = vsel %vm245_vm4, %v359_v56, %v355_v8  ;;  %v387_v13 = vsel %vm386_vm8, %v322_v62, %v385_v2 }
  0xcd   :  { %v187_v1 = vpop.xlane.xlu1 %186  ;;  %v369_v14 = vsel %vm231_vm2, %v368_v60, %v364_v5  ;;  %v389_v15 = vsel %vm388_vm9, %v341_v3, %v387_v13 }
  0xce   :  { %v184_v9 = vpop.xlane.xlu0 %183  ;;  %v378_v10 = vrot.slane %v187_v1, %v933_v7  ;;  %v391_v17 = vsel %vm390_vm10, %v360_v11, %v389_v15 }
  0xcf   :  { %v373_v12 = vrot.slane %v184_v9, %v927_v4  ;;  %v488_v4 = vld [vmem:[%s1035_s3] sm:$0x3] }
  0xd0   :  { %622 = vmatpush3.msk.msra.mxu1 %vm500_vm12, %v488_v4 }
  0xd1   :  { %v374_v6 = vsel %vm238_vm3, %v373_v12, %v369_v14 }
  0xd2   :  { %v379_v7 = vsel %vm245_vm4, %v378_v10, %v374_v6 }
  0xd3   :  { %v393_v18 = vsel %vm392_vm11, %v379_v7, %v391_v17 }
  0xd4   :  { %v395_v19 = vadd.f32 %v393_v18, %v91_v16 }
  0xd6   :  { %397 = vst.msk [vmem:[#allocation2] sm:$0xff] %vm25_vm0, %v395_v19 }
  0xdd   :  { %v401_v20 = vld [vmem:[#allocation2] sm:$0xff] }
  0xde   :  { %v402_v21 = vmul.f32 0.00390625, %v401_v20 }
  0xe0   :  { %619 = vmatmul.mubr.msk.f32.vlgmr.msra.gmra.mrb[0].mxu0 %vm25_vm0, %v402_v21 }
 0x1b3   :  { %v483_v23 = vpop.f32.mrb[0].mxu0 }
 0x1b4   :  { %v484_v24 = vadd.f32 %v597_v22, %v483_v23  ;;  %v620_v25 = vpop.f32.mrb[1].mxu0 }
 0x1b6   :  { %v487_v26 = vmax.f32 %v484_v24, 0.0 }
 0x1b8   :  { %624 = vmatmul.mubr.msk.f32.vlgmr.msra.gmra.mrb[0].mxu1 %vm496_vm13, %v487_v26 }
 0x28b   :  { %v570_v28 = vpop.f32.mrb[0].mxu1 }
 0x28c   :  { %v571_v29 = vadd.f32 %v599_v27, %v570_v28  ;;  %v625_v30 = vpop.f32.mrb[1].mxu1 }
 0x28e   :  { %v602_v31 = vmul.f32 -1.442695, %v571_v29 }
 0x290   :  { %638 = vpow2.f32 %v602_v31 }
 0x29a   :  { %v639_v32 = vpop.eup %638 }
 0x29b   :  { %v577_v33 = vadd.f32 1.0, %v639_v32 }
 0x29d   :  { %640 = vrcp.f32 %v577_v33 }
 0x2a7   :  { %v641_v34 = vpop.eup %640 }
 0x2a8   :  { %580 = vst.msk [vmem:[#allocation3] sm:$0xff] %vm25_vm0, %v641_v34 }
 0x2a9   :  { %585 = vsyncadd [#allocation4], 96  ;;  %s669_s2 = smov [#allocation3]  }
 0x2aa   :  { %s586_s3 = sshll.u32 %s669_s2, 4  ;;  %s587_s3 = int_to_ptr.vmem [resolvable:$true] %s586_s3 }
 0x2ab   :  { %s642_s8 = scalar_lea.vmem %s587_s3, 32  ;;  %s646_s9 = scalar_lea.vmem %s587_s3, 128 }
 0x2ac   :  { %p643_p0 = scmp.ne.s32.totalorder %s587_s3, %s642_s8  ;;  %p647_p1 = scmp.lt.s32.totalorder %s587_s3, %s587_s3 }
 0x2ad   :  { %p648_p2 = scmp.lt.s32.totalorder %s646_s9, %s642_s8 }
 0x2af   :  { %p649_p3 = por %p648_p2, %p647_p1 }
 0x2b1   :  { %p650_p4 = pnand %p649_p3, %p643_p0 }
 0x2b3   :  { %653 = shalt.err (!%p650_p4)
}
 0x2b4   :  { %s654_s11 = scalar_lea.hbm %s1037_s5, 32 }
 0x2b5   :  { %p655_p5 = scmp.ne.s32.totalorder %s1037_s5, %s654_s11  ;;  %p658_p6 = scmp.lt.u32.totalorder %s654_s11, %s1037_s5 }
 0x2b7   :  { %p660_p7 = pnand %p658_p6, %p655_p5 }
 0x2b9   :  { %663 = shalt.err (!%p660_p7)
}
 0x2ba   :  { %s670_s16 = smov 32   ;;  %s671_s17 = smov 2  }
 0x2bb   :  { %592 = dma.vmem_to_hbm [thread:$0]  %s587_s3, 32, %s1037_s5, [#allocation4], %s670_s16, %s670_s16, %s671_s17  }
 0x2bc   :  { %664 = dma.done.wait [#allocation4], 128  }
 0x2bd   :  { %665 = vsyncadd [#allocation4], 4294967168 }
 0x2be   :  { %596 = vsyncpa [#allocation4], 1 }

</bundles_post_ra>
